<compile_context>
chip_gen: v7x
topology: tpu7x:2x2x1
jax: 0.10.0
libtpu: 0.0.40
codegen_flags: <defaults>
</compile_context>

<pallas_src>
import functools

import jax
import jax.numpy as jnp
from jax.experimental import pallas as pl
from jax.experimental.pallas import tpu as pltpu

LN_EPS = 1e-5


def _round_up(n, m):
    return ((n + m - 1) // m) * m


def _cdiv(a, b):
    return -(-a // b)


def _double_critic_kernel(h_pad, true_h, fuse_hidden,
                          x_ref,
                          w1_ref, b1_ref, g1_ref, be1_ref,
                          w2_ref, b2_ref, g2_ref, be2_ref,
                          w3_ref, b3_ref, g3_ref, be3_ref,
                          w4_ref, b4_ref,
                          out_ref):
    """Fused forward for both critics on one batch tile.

    Shapes seen by the kernel (TB = batch tile, Hp = 128-padded hidden width):
      x_ref   (TB, D_in)            w1_ref (D_in, 2*Hp)   b1_ref (1, 2*Hp)
      g*/be*  (2, 1, Hp)            w4_ref (2, 1, Hp)     b4_ref (1, 2)
      fused hidden layers:     w2/w3 (2*Hp, 2*Hp)  b2/b3 (1, 2*Hp)
      per-critic hidden layers: w2/w3 (2, Hp, Hp)  b2/b3 (2, 1, Hp)
      out_ref (TB, 2)
    """
    mm = w1_ref.dtype
    inv_h = 1.0 / float(true_h)

    # INVARIANT the mask-free LN statistics rely on: every padded lane of the
    # pre-LN activation `a` is exactly zero (W/b are zero-padded), and because
    # gamma/beta are zero-padded too, ln_relu's own output is also exactly zero
    # on padded lanes -- so the invariant propagates through all three layers.
    # sum(a)/H and sum(a*a)/H therefore equal the statistics over the TRUE
    # hidden width.  Do not change the weight padding without revisiting this.
    def ln_relu(a, g, b):
        mu = jnp.sum(a, axis=-1, keepdims=True) * inv_h
        var = jnp.sum(a * a, axis=-1, keepdims=True) * inv_h - mu * mu
        y = (a - mu) * jax.lax.rsqrt(var + LN_EPS) * g + b
        return jnp.maximum(y, 0.0)

    x = x_ref[...].astype(mm)

    # Layer 1: one MXU pass serves both critics (weights lane-concatenated).
    hc = jnp.dot(x, w1_ref[...], preferred_element_type=jnp.float32) + b1_ref[...]
    h = [ln_relu(hc[:, :h_pad], g1_ref[0], be1_ref[0]),
         ln_relu(hc[:, h_pad:], g1_ref[1], be1_ref[1])]

    layers = ((w2_ref, b2_ref, g2_ref, be2_ref),
              (w3_ref, b3_ref, g3_ref, be3_ref))
    if fuse_hidden:
        # v6e/v7x: 2x256^2 MXU -> one 2*Hp-wide block-diagonal pass per layer
        # (same cadence as a 128-wide pass, halves MXU issue count).
        for w_ref, b_ref, g_ref, be_ref in layers:
            hcat = jnp.concatenate([h[0], h[1]], axis=-1).astype(mm)
            hc = jnp.dot(hcat, w_ref[...],
                         preferred_element_type=jnp.float32) + b_ref[...]
            h = [ln_relu(hc[:, :h_pad], g_ref[0], be_ref[0]),
                 ln_relu(hc[:, h_pad:], g_ref[1], be_ref[1])]
    else:
        # v5e: 4x128^2 MXU -> two useful 128-wide passes beat a 256-wide
        # block-diagonal pass (half of whose tiles would be all-zero).
        for w_ref, b_ref, g_ref, be_ref in layers:
            a = [jnp.dot(h[q].astype(mm), w_ref[q],
                         preferred_element_type=jnp.float32) + b_ref[q]
                 for q in range(2)]
            h = [ln_relu(a[q], g_ref[q], be_ref[q]) for q in range(2)]

    # Final Linear(H, 1): VPU multiply + cross-lane (XLU) reduce instead of an
    # N=1 MXU matmul.  Both critics' scalars go out in one (TB, 2) store.
    s0 = jnp.sum(h[0] * w4_ref[0], axis=-1, keepdims=True)   # (TB, 1)
    s1 = jnp.sum(h[1] * w4_ref[1], axis=-1, keepdims=True)   # (TB, 1)
    tb = out_ref.shape[0]
    col = jax.lax.broadcasted_iota(jnp.int32, (tb, 2), 1)
    out_ref[...] = jnp.where(col == 0, s0, s1) + b4_ref[...]


def prepare_params(params, *, mm_dtype=jnp.bfloat16, fuse_hidden=True):
    """One-time packing / padding of the two critics' parameters.

    Call once outside the step function and reuse the result: the per-forward
    wrapper then contains no pad/concat XLA ops at all.

    mm_dtype: dtype of the MXU operands (x cast in-kernel, W1..W3 stored here).
              bf16 by default (v6e/v7x native); pass jnp.float32 for exact math.
    fuse_hidden: True  -> block-diagonal (2*Hp, 2*Hp) layer-2/3 weights (v6e/v7x),
                 False -> per-critic (2, Hp, Hp) weights (use on v5e).
    """
    f32 = jnp.float32
    H = params["w2"].shape[-1]
    Hp = _round_up(H, 128)
    D_in = params["w1"].shape[1]

    def pad3(p, r, c, dtype=f32):
        out = jnp.zeros((2, r, c), dtype)
        return out.at[:, :p.shape[1], :p.shape[2]].set(p.astype(dtype))

    # Layer 1: concatenate the two critics along the output (lane) axis.  The
    # contraction dim keeps its TRUE size, so x needs no lane padding / copy.
    w1p = pad3(params["w1"], D_in, Hp, mm_dtype)            # (2, D_in, Hp)
    w1c = jnp.concatenate([w1p[0], w1p[1]], axis=-1)        # (D_in, 2*Hp)
    b1p = pad3(params["b1"], 1, Hp)
    b1c = jnp.concatenate([b1p[0], b1p[1]], axis=-1)        # (1, 2*Hp)
    g1p, be1p = pad3(params["g1"], 1, Hp), pad3(params["be1"], 1, Hp)

    def hidden(widx, bidx):
        wp = pad3(params[widx], Hp, Hp, mm_dtype)           # (2, Hp, Hp)
        bp = pad3(params[bidx], 1, Hp)                      # (2, 1, Hp)
        if not fuse_hidden:
            return wp, bp
        z = jnp.zeros((Hp, Hp), mm_dtype)
        wbd = jnp.concatenate(
            [jnp.concatenate([wp[0], z], axis=-1),
             jnp.concatenate([z, wp[1]], axis=-1)], axis=0)  # (2*Hp, 2*Hp)
        bc = jnp.concatenate([bp[0], bp[1]], axis=-1)        # (1, 2*Hp)
        return wbd, bc

    w2p, b2p = hidden("w2", "b2")
    g2p, be2p = pad3(params["g2"], 1, Hp), pad3(params["be2"], 1, Hp)
    w3p, b3p = hidden("w3", "b3")
    g3p, be3p = pad3(params["g3"], 1, Hp), pad3(params["be3"], 1, Hp)

    # Final layer as a per-critic row vector (VPU multiply + lane reduce).
    w4p = jnp.zeros((2, 1, Hp), f32).at[:, 0, :H].set(params["w4"][:, :, 0])
    b4p = params["b4"].reshape(1, 2).astype(f32)             # (1, 2)

    weights = (w1c, b1c, g1p, be1p,
               w2p, b2p, g2p, be2p,
               w3p, b3p, g3p, be3p,
               w4p, b4p)
    return {"weights": weights, "h": H, "h_pad": Hp, "d_in": D_in,
            "fuse_hidden": fuse_hidden}


def droq_double_critic_forward(x, prepared, *, block_b=1024):
    """x: (B, D_in) (f32 or bf16).  prepared: output of prepare_params().

    Returns (q1, q2), each of shape (B,) fp32.
    """
    B, D_in = x.shape
    assert D_in == prepared["d_in"], "input width does not match the parameters"
    H, Hp = prepared["h"], prepared["h_pad"]
    weights = prepared["weights"]
    fuse_hidden = prepared["fuse_hidden"]

    # Balanced batch tiles: TB is a multiple of 8 (sublane rule), tiles are
    # sized so the last one is not (nearly) all padding, and >= 2 tiles are
    # produced for B >= 256 so the "parallel" batch axis can be sharded across
    # both TensorCores on v7x.  Edge blocks (B % TB != 0) rely on Pallas'
    # masked partial reads/stores -- no batch padding copy is made.
    tb_cap = max(8, _round_up(block_b, 8))
    n_tiles = _cdiv(B, tb_cap)
    if B >= 256:
        n_tiles = max(n_tiles, 2)
    if n_tiles == 1:
        TB = B                                   # block == full dim: always legal
    else:
        TB = _round_up(_cdiv(B, n_tiles), 8)
    grid_b = _cdiv(B, TB)

    def resident(shape):
        # Constant index_map -> the parameter stays VMEM-resident across tiles.
        nd = len(shape)
        return pl.BlockSpec(shape, lambda i, _n=nd: (0,) * _n)

    in_specs = [pl.BlockSpec((TB, D_in), lambda i: (i, 0))]
    in_specs += [resident(w.shape) for w in weights]

    kernel = functools.partial(_double_critic_kernel, Hp, H, fuse_hidden)

    out = pl.pallas_call(
        kernel,
        out_shape=jax.ShapeDtypeStruct((B, 2), jnp.float32),
        grid_spec=pltpu.PrefetchScalarGridSpec(
            num_scalar_prefetch=0,
            grid=(grid_b,),
            in_specs=in_specs,
            out_specs=pl.BlockSpec((TB, 2), lambda i: (i, 0)),
        ),
        compiler_params=pltpu.CompilerParams(
            # Batch tiles are independent -> shard across both TCs on v7x.
            dimension_semantics=("parallel",),
            # Headroom for the fused (TB, 2*Hp) f32 temporaries at large TB;
            # stays under v7x's 64 MiB physical VMEM.
            vmem_limit_bytes=48 * 1024 * 1024,
        ),
    )(x, *weights)

    return out[:, 0], out[:, 1]


def init_params(key, d_in, hidden):
    """Deterministic init mimicking PyTorch defaults.

    Linear: U(-1/sqrt(fan_in), 1/sqrt(fan_in)) for W and b.
    LayerNorm: gamma = 1, beta = 0.
    All params carry a leading axis of size 2 (the two critics).
    """
    ks = jax.random.split(key, 4)

    def linear(k, fan_in, fan_out):
        kw, kb = jax.random.split(k)
        bound = 1.0 / jnp.sqrt(jnp.float32(fan_in))
        w = jax.random.uniform(kw, (2, fan_in, fan_out), jnp.float32, -bound, bound)
        b = jax.random.uniform(kb, (2, 1, fan_out), jnp.float32, -bound, bound)
        return w, b

    p = {}
    p["w1"], p["b1"] = linear(ks[0], d_in, hidden)
    p["w2"], p["b2"] = linear(ks[1], hidden, hidden)
    p["w3"], p["b3"] = linear(ks[2], hidden, hidden)
    p["w4"], p["b4"] = linear(ks[3], hidden, 1)
    for i in (1, 2, 3):
        p[f"g{i}"] = jnp.ones((2, 1, hidden), jnp.float32)
        p[f"be{i}"] = jnp.zeros((2, 1, hidden), jnp.float32)
    return p


def _reference_forward(x, params):
    """Pure-JAX f32 reference for correctness checking."""
    def one(q):
        h = x
        for i in (1, 2, 3):
            h = h @ params[f"w{i}"][q] + params[f"b{i}"][q]
            mu = jnp.mean(h, -1, keepdims=True)
            var = jnp.mean(jnp.square(h - mu), -1, keepdims=True)
            h = (h - mu) / jnp.sqrt(var + LN_EPS)
            h = h * params[f"g{i}"][q] + params[f"be{i}"][q]
            h = jnp.maximum(h, 0.0)
        return (h @ params["w4"][q] + params["b4"][q])[:, 0]
    return one(0), one(1)


if __name__ == "__main__":
    # Small shapes consistent with the module: flat neighborhood features,
    # previous-direction features and an action vector concatenated together.
    B = 8            # batch of streamline points
    NEIGH = 16       # flat neighborhood feature size
    PREV = 8         # prev_dirs size
    ACT = 8          # action_dim
    HIDDEN = 32      # format_widths("32-32-32") * critic_size_factor(=1)
    D_IN = NEIGH + PREV + ACT

    key = jax.random.PRNGKey(0)
    k_n, k_p, k_a, k_w, k_big = jax.random.split(key, 5)
    neighborhood = jax.random.normal(k_n, (B, NEIGH), jnp.float32)
    prev_dirs = jax.random.normal(k_p, (B, PREV), jnp.float32)
    action = jax.random.normal(k_a, (B, ACT), jnp.float32)

    # Concatenation glue stays in plain JAX.
    x = jnp.concatenate([neighborhood, prev_dirs, action], axis=-1)

    params = init_params(k_w, D_IN, HIDDEN)
    r1, r2 = _reference_forward(x, params)

    # --- default path: bf16 matmul operands, fused 2*Hp-wide hidden layers ---
    prep_bf16 = prepare_params(params)                       # one-time packing
    q1, q2 = droq_double_critic_forward(x, prep_bf16)
    jax.block_until_ready((q1, q2))
    assert q1.shape == (B,) and q2.shape == (B,)
    # bf16 operands (f32 accumulation / f32 LayerNorm): loosened tolerance.
    assert jnp.allclose(q1, r1, atol=1e-1, rtol=1e-1)
    assert jnp.allclose(q2, r2, atol=1e-1, rtol=1e-1)

    # --- f32 operands: exact-math check against the reference ---
    prep_f32 = prepare_params(params, mm_dtype=jnp.float32)
    q1f, q2f = droq_double_critic_forward(x, prep_f32)
    jax.block_until_ready((q1f, q2f))
    assert jnp.allclose(q1f, r1, atol=1e-4, rtol=1e-4)
    assert jnp.allclose(q2f, r2, atol=1e-4, rtol=1e-4)

    # --- v5e-style per-critic (non-fused) hidden layers ---
    prep_v5e = prepare_params(params, mm_dtype=jnp.float32, fuse_hidden=False)
    q1v, q2v = droq_double_critic_forward(x, prep_v5e)
    jax.block_until_ready((q1v, q2v))
    assert jnp.allclose(q1v, r1, atol=1e-4, rtol=1e-4)
    assert jnp.allclose(q2v, r2, atol=1e-4, rtol=1e-4)

    # --- batch-tiled path: grid > 1, balanced tiles, masked edge block ---
    B_BIG = 260
    x_big = jax.random.normal(k_big, (B_BIG, D_IN), jnp.float32)
    q1b, q2b = droq_double_critic_forward(x_big, prep_f32, block_b=128)
    jax.block_until_ready((q1b, q2b))
    r1b, r2b = _reference_forward(x_big, params)
    assert q1b.shape == (B_BIG,) and q2b.shape == (B_BIG,)
    assert jnp.allclose(q1b, r1b, atol=1e-4, rtol=1e-4)
    assert jnp.allclose(q2b, r2b, atol=1e-4, rtol=1e-4)

    print("KERNEL_OK")
</pallas_src>

<mosaic_0001>
module attributes {stable_mosaic.version = 11 : i64} {
  func.func @_double_critic_kernel(%arg0: i32, %arg1: memref<8x32xf32, #tpu.memory_space<vmem>>, %arg2: memref<32x256xbf16, #tpu.memory_space<vmem>>, %arg3: memref<1x256xf32, #tpu.memory_space<vmem>>, %arg4: memref<2x1x128xf32, #tpu.memory_space<vmem>>, %arg5: memref<2x1x128xf32, #tpu.memory_space<vmem>>, %arg6: memref<256x256xbf16, #tpu.memory_space<vmem>>, %arg7: memref<1x256xf32, #tpu.memory_space<vmem>>, %arg8: memref<2x1x128xf32, #tpu.memory_space<vmem>>, %arg9: memref<2x1x128xf32, #tpu.memory_space<vmem>>, %arg10: memref<256x256xbf16, #tpu.memory_space<vmem>>, %arg11: memref<1x256xf32, #tpu.memory_space<vmem>>, %arg12: memref<2x1x128xf32, #tpu.memory_space<vmem>>, %arg13: memref<2x1x128xf32, #tpu.memory_space<vmem>>, %arg14: memref<2x1x128xf32, #tpu.memory_space<vmem>>, %arg15: memref<1x2xf32, #tpu.memory_space<vmem>>, %arg16: memref<8x2xf32, #tpu.memory_space<vmem>>) attributes {dimension_semantics = [#tpu.dimension_semantics<parallel>], iteration_bounds = array<i64: 1>, scalar_prefetch = 0 : i64, scratch_operands = 0 : i64, tpu.core_type = #tpu.core_type<tc>, window_params = [{transform_indices = @transform_0, window_bounds = array<i64: 8, 32>}, {pipeline_mode = #tpu.pipeline_mode<synchronous>, transform_indices = @transform_1, window_bounds = array<i64: 32, 256>}, {pipeline_mode = #tpu.pipeline_mode<synchronous>, transform_indices = @transform_2, window_bounds = array<i64: 1, 256>}, {pipeline_mode = #tpu.pipeline_mode<synchronous>, transform_indices = @transform_3, window_bounds = array<i64: 2, 1, 128>}, {pipeline_mode = #tpu.pipeline_mode<synchronous>, transform_indices = @transform_4, window_bounds = array<i64: 2, 1, 128>}, {pipeline_mode = #tpu.pipeline_mode<synchronous>, transform_indices = @transform_5, window_bounds = array<i64: 256, 256>}, {pipeline_mode = #tpu.pipeline_mode<synchronous>, transform_indices = @transform_6, window_bounds = array<i64: 1, 256>}, {pipeline_mode = #tpu.pipeline_mode<synchronous>, transform_indices = @transform_7, window_bounds = array<i64: 2, 1, 128>}, {pipeline_mode = #tpu.pipeline_mode<synchronous>, transform_indices = @transform_8, window_bounds = array<i64: 2, 1, 128>}, {pipeline_mode = #tpu.pipeline_mode<synchronous>, transform_indices = @transform_9, window_bounds = array<i64: 256, 256>}, {pipeline_mode = #tpu.pipeline_mode<synchronous>, transform_indices = @transform_10, window_bounds = array<i64: 1, 256>}, {pipeline_mode = #tpu.pipeline_mode<synchronous>, transform_indices = @transform_11, window_bounds = array<i64: 2, 1, 128>}, {pipeline_mode = #tpu.pipeline_mode<synchronous>, transform_indices = @transform_12, window_bounds = array<i64: 2, 1, 128>}, {pipeline_mode = #tpu.pipeline_mode<synchronous>, transform_indices = @transform_13, window_bounds = array<i64: 2, 1, 128>}, {pipeline_mode = #tpu.pipeline_mode<synchronous>, transform_indices = @transform_14, window_bounds = array<i64: 1, 2>}, {transform_indices = @transform_15, window_bounds = array<i64: 8, 2>}]} {
    %c0 = arith.constant 0 : index
    %c0_0 = arith.constant 0 : index
    %0 = vector.load %arg1[%c0, %c0_0] : memref<8x32xf32, #tpu.memory_space<vmem>>, vector<8x32xf32>
    %1 = arith.truncf %0 : vector<8x32xf32> to vector<8x32xbf16>
    %c0_1 = arith.constant 0 : index
    %c0_2 = arith.constant 0 : index
    %2 = vector.load %arg2[%c0_1, %c0_2] : memref<32x256xbf16, #tpu.memory_space<vmem>>, vector<32x256xbf16>
    %cst = arith.constant dense<0.000000e+00> : vector<8x256xf32>
    %3 = tpu.matmul %1, %2, %cst {dimension_numbers = #tpu.dot_dimension_numbers<[1], [0], [0], [1], [0, 0, 1, 1], [], []>} : vector<8x32xbf16>, vector<32x256xbf16>, vector<8x256xf32> -> vector<8x256xf32>
    %c0_3 = arith.constant 0 : index
    %c0_4 = arith.constant 0 : index
    %4 = vector.load %arg3[%c0_3, %c0_4] : memref<1x256xf32, #tpu.memory_space<vmem>>, vector<1x256xf32>
    %5 = vector.broadcast %4 : vector<1x256xf32> to vector<8x256xf32>
    %6 = arith.addf %3, %5 : vector<8x256xf32>
    %7 = vector.extract_strided_slice %6 {offsets = [0, 0], sizes = [8, 128], strides = [1, 1]} : vector<8x256xf32> to vector<8x128xf32>
    %c0_5 = arith.constant 0 : index
    %c0_6 = arith.constant 0 : index
    %c0_7 = arith.constant 0 : index
    %8 = vector.load %arg4[%c0_5, %c0_6, %c0_7] : memref<2x1x128xf32, #tpu.memory_space<vmem>>, vector<1x1x128xf32>
    %9 = vector.shape_cast %8 : vector<1x1x128xf32> to vector<1x128xf32>
    %c0_8 = arith.constant 0 : index
    %c0_9 = arith.constant 0 : index
    %c0_10 = arith.constant 0 : index
    %10 = vector.load %arg5[%c0_8, %c0_9, %c0_10] : memref<2x1x128xf32, #tpu.memory_space<vmem>>, vector<1x1x128xf32>
    %11 = vector.shape_cast %10 : vector<1x1x128xf32> to vector<1x128xf32>
    %cst_11 = arith.constant dense<0.000000e+00> : vector<8xf32>
    %12 = vector.multi_reduction <add>, %7, %cst_11 [1] : vector<8x128xf32> to vector<8xf32>
    %13 = vector.shape_cast %12 : vector<8xf32> to vector<8x1xf32>
    %cst_12 = arith.constant 3.125000e-02 : f32
    %14 = vector.broadcast %cst_12 : f32 to vector<8x1xf32>
    %15 = arith.mulf %13, %14 : vector<8x1xf32>
    %16 = arith.mulf %7, %7 : vector<8x128xf32>
    %cst_13 = arith.constant dense<0.000000e+00> : vector<8xf32>
    %17 = vector.multi_reduction <add>, %16, %cst_13 [1] : vector<8x128xf32> to vector<8xf32>
    %18 = vector.shape_cast %17 : vector<8xf32> to vector<8x1xf32>
    %cst_14 = arith.constant 3.125000e-02 : f32
    %19 = vector.broadcast %cst_14 : f32 to vector<8x1xf32>
    %20 = arith.mulf %18, %19 : vector<8x1xf32>
    %21 = arith.mulf %15, %15 : vector<8x1xf32>
    %22 = arith.subf %20, %21 : vector<8x1xf32>
    %23 = vector.broadcast %15 : vector<8x1xf32> to vector<8x128xf32>
    %24 = arith.subf %7, %23 : vector<8x128xf32>
    %cst_15 = arith.constant 9.99999974E-6 : f32
    %25 = vector.broadcast %cst_15 : f32 to vector<8x1xf32>
    %26 = arith.addf %22, %25 : vector<8x1xf32>
    %27 = math.rsqrt %26 : vector<8x1xf32>
    %28 = vector.broadcast %27 : vector<8x1xf32> to vector<8x128xf32>
    %29 = arith.mulf %24, %28 : vector<8x128xf32>
    %30 = vector.broadcast %9 : vector<1x128xf32> to vector<8x128xf32>
    %31 = arith.mulf %29, %30 : vector<8x128xf32>
    %32 = vector.broadcast %11 : vector<1x128xf32> to vector<8x128xf32>
    %33 = arith.addf %31, %32 : vector<8x128xf32>
    %cst_16 = arith.constant 0.000000e+00 : f32
    %34 = vector.broadcast %cst_16 : f32 to vector<8x128xf32>
    %35 = arith.maximumf %33, %34 : vector<8x128xf32>
    %36 = vector.extract_strided_slice %6 {offsets = [0, 128], sizes = [8, 128], strides = [1, 1]} : vector<8x256xf32> to vector<8x128xf32>
    %c1 = arith.constant 1 : index
    %c0_17 = arith.constant 0 : index
    %c0_18 = arith.constant 0 : index
    %37 = vector.load %arg4[%c1, %c0_17, %c0_18] : memref<2x1x128xf32, #tpu.memory_space<vmem>>, vector<1x1x128xf32>
    %38 = vector.shape_cast %37 : vector<1x1x128xf32> to vector<1x128xf32>
    %c1_19 = arith.constant 1 : index
    %c0_20 = arith.constant 0 : index
    %c0_21 = arith.constant 0 : index
    %39 = vector.load %arg5[%c1_19, %c0_20, %c0_21] : memref<2x1x128xf32, #tpu.memory_space<vmem>>, vector<1x1x128xf32>
    %40 = vector.shape_cast %39 : vector<1x1x128xf32> to vector<1x128xf32>
    %cst_22 = arith.constant dense<0.000000e+00> : vector<8xf32>
    %41 = vector.multi_reduction <add>, %36, %cst_22 [1] : vector<8x128xf32> to vector<8xf32>
    %42 = vector.shape_cast %41 : vector<8xf32> to vector<8x1xf32>
    %cst_23 = arith.constant 3.125000e-02 : f32
    %43 = vector.broadcast %cst_23 : f32 to vector<8x1xf32>
    %44 = arith.mulf %42, %43 : vector<8x1xf32>
    %45 = arith.mulf %36, %36 : vector<8x128xf32>
    %cst_24 = arith.constant dense<0.000000e+00> : vector<8xf32>
    %46 = vector.multi_reduction <add>, %45, %cst_24 [1] : vector<8x128xf32> to vector<8xf32>
    %47 = vector.shape_cast %46 : vector<8xf32> to vector<8x1xf32>
    %cst_25 = arith.constant 3.125000e-02 : f32
    %48 = vector.broadcast %cst_25 : f32 to vector<8x1xf32>
    %49 = arith.mulf %47, %48 : vector<8x1xf32>
    %50 = arith.mulf %44, %44 : vector<8x1xf32>
    %51 = arith.subf %49, %50 : vector<8x1xf32>
    %52 = vector.broadcast %44 : vector<8x1xf32> to vector<8x128xf32>
    %53 = arith.subf %36, %52 : vector<8x128xf32>
    %cst_26 = arith.constant 9.99999974E-6 : f32
    %54 = vector.broadcast %cst_26 : f32 to vector<8x1xf32>
    %55 = arith.addf %51, %54 : vector<8x1xf32>
    %56 = math.rsqrt %55 : vector<8x1xf32>
    %57 = vector.broadcast %56 : vector<8x1xf32> to vector<8x128xf32>
    %58 = arith.mulf %53, %57 : vector<8x128xf32>
    %59 = vector.broadcast %38 : vector<1x128xf32> to vector<8x128xf32>
    %60 = arith.mulf %58, %59 : vector<8x128xf32>
    %61 = vector.broadcast %40 : vector<1x128xf32> to vector<8x128xf32>
    %62 = arith.addf %60, %61 : vector<8x128xf32>
    %cst_27 = arith.constant 0.000000e+00 : f32
    %63 = vector.broadcast %cst_27 : f32 to vector<8x128xf32>
    %64 = arith.maximumf %62, %63 : vector<8x128xf32>
    %65 = tpu.concatenate %35, %64 in 1 : vector<8x128xf32>, vector<8x128xf32> -> vector<8x256xf32>
    %66 = arith.truncf %65 : vector<8x256xf32> to vector<8x256xbf16>
    %c0_28 = arith.constant 0 : index
    %c0_29 = arith.constant 0 : index
    %67 = vector.load %arg6[%c0_28, %c0_29] : memref<256x256xbf16, #tpu.memory_space<vmem>>, vector<256x256xbf16>
    %cst_30 = arith.constant dense<0.000000e+00> : vector<8x256xf32>
    %68 = tpu.matmul %66, %67, %cst_30 {dimension_numbers = #tpu.dot_dimension_numbers<[1], [0], [0], [1], [0, 0, 1, 1], [], []>} : vector<8x256xbf16>, vector<256x256xbf16>, vector<8x256xf32> -> vector<8x256xf32>
    %c0_31 = arith.constant 0 : index
    %c0_32 = arith.constant 0 : index
    %69 = vector.load %arg7[%c0_31, %c0_32] : memref<1x256xf32, #tpu.memory_space<vmem>>, vector<1x256xf32>
    %70 = vector.broadcast %69 : vector<1x256xf32> to vector<8x256xf32>
    %71 = arith.addf %68, %70 : vector<8x256xf32>
    %72 = vector.extract_strided_slice %71 {offsets = [0, 0], sizes = [8, 128], strides = [1, 1]} : vector<8x256xf32> to vector<8x128xf32>
    %c0_33 = arith.constant 0 : index
    %c0_34 = arith.constant 0 : index
    %c0_35 = arith.constant 0 : index
    %73 = vector.load %arg8[%c0_33, %c0_34, %c0_35] : memref<2x1x128xf32, #tpu.memory_space<vmem>>, vector<1x1x128xf32>
    %74 = vector.shape_cast %73 : vector<1x1x128xf32> to vector<1x128xf32>
    %c0_36 = arith.constant 0 : index
    %c0_37 = arith.constant 0 : index
    %c0_38 = arith.constant 0 : index
    %75 = vector.load %arg9[%c0_36, %c0_37, %c0_38] : memref<2x1x128xf32, #tpu.memory_space<vmem>>, vector<1x1x128xf32>
    %76 = vector.shape_cast %75 : vector<1x1x128xf32> to vector<1x128xf32>
    %cst_39 = arith.constant dense<0.000000e+00> : vector<8xf32>
    %77 = vector.multi_reduction <add>, %72, %cst_39 [1] : vector<8x128xf32> to vector<8xf32>
    %78 = vector.shape_cast %77 : vector<8xf32> to vector<8x1xf32>
    %cst_40 = arith.constant 3.125000e-02 : f32
    %79 = vector.broadcast %cst_40 : f32 to vector<8x1xf32>
    %80 = arith.mulf %78, %79 : vector<8x1xf32>
    %81 = arith.mulf %72, %72 : vector<8x128xf32>
    %cst_41 = arith.constant dense<0.000000e+00> : vector<8xf32>
    %82 = vector.multi_reduction <add>, %81, %cst_41 [1] : vector<8x128xf32> to vector<8xf32>
    %83 = vector.shape_cast %82 : vector<8xf32> to vector<8x1xf32>
    %cst_42 = arith.constant 3.125000e-02 : f32
    %84 = vector.broadcast %cst_42 : f32 to vector<8x1xf32>
    %85 = arith.mulf %83, %84 : vector<8x1xf32>
    %86 = arith.mulf %80, %80 : vector<8x1xf32>
    %87 = arith.subf %85, %86 : vector<8x1xf32>
    %88 = vector.broadcast %80 : vector<8x1xf32> to vector<8x128xf32>
    %89 = arith.subf %72, %88 : vector<8x128xf32>
    %cst_43 = arith.constant 9.99999974E-6 : f32
    %90 = vector.broadcast %cst_43 : f32 to vector<8x1xf32>
    %91 = arith.addf %87, %90 : vector<8x1xf32>
    %92 = math.rsqrt %91 : vector<8x1xf32>
    %93 = vector.broadcast %92 : vector<8x1xf32> to vector<8x128xf32>
    %94 = arith.mulf %89, %93 : vector<8x128xf32>
    %95 = vector.broadcast %74 : vector<1x128xf32> to vector<8x128xf32>
    %96 = arith.mulf %94, %95 : vector<8x128xf32>
    %97 = vector.broadcast %76 : vector<1x128xf32> to vector<8x128xf32>
    %98 = arith.addf %96, %97 : vector<8x128xf32>
    %cst_44 = arith.constant 0.000000e+00 : f32
    %99 = vector.broadcast %cst_44 : f32 to vector<8x128xf32>
    %100 = arith.maximumf %98, %99 : vector<8x128xf32>
    %101 = vector.extract_strided_slice %71 {offsets = [0, 128], sizes = [8, 128], strides = [1, 1]} : vector<8x256xf32> to vector<8x128xf32>
    %c1_45 = arith.constant 1 : index
    %c0_46 = arith.constant 0 : index
    %c0_47 = arith.constant 0 : index
    %102 = vector.load %arg8[%c1_45, %c0_46, %c0_47] : memref<2x1x128xf32, #tpu.memory_space<vmem>>, vector<1x1x128xf32>
    %103 = vector.shape_cast %102 : vector<1x1x128xf32> to vector<1x128xf32>
    %c1_48 = arith.constant 1 : index
    %c0_49 = arith.constant 0 : index
    %c0_50 = arith.constant 0 : index
    %104 = vector.load %arg9[%c1_48, %c0_49, %c0_50] : memref<2x1x128xf32, #tpu.memory_space<vmem>>, vector<1x1x128xf32>
    %105 = vector.shape_cast %104 : vector<1x1x128xf32> to vector<1x128xf32>
    %cst_51 = arith.constant dense<0.000000e+00> : vector<8xf32>
    %106 = vector.multi_reduction <add>, %101, %cst_51 [1] : vector<8x128xf32> to vector<8xf32>
    %107 = vector.shape_cast %106 : vector<8xf32> to vector<8x1xf32>
    %cst_52 = arith.constant 3.125000e-02 : f32
    %108 = vector.broadcast %cst_52 : f32 to vector<8x1xf32>
    %109 = arith.mulf %107, %108 : vector<8x1xf32>
    %110 = arith.mulf %101, %101 : vector<8x128xf32>
    %cst_53 = arith.constant dense<0.000000e+00> : vector<8xf32>
    %111 = vector.multi_reduction <add>, %110, %cst_53 [1] : vector<8x128xf32> to vector<8xf32>
    %112 = vector.shape_cast %111 : vector<8xf32> to vector<8x1xf32>
    %cst_54 = arith.constant 3.125000e-02 : f32
    %113 = vector.broadcast %cst_54 : f32 to vector<8x1xf32>
    %114 = arith.mulf %112, %113 : vector<8x1xf32>
    %115 = arith.mulf %109, %109 : vector<8x1xf32>
    %116 = arith.subf %114, %115 : vector<8x1xf32>
    %117 = vector.broadcast %109 : vector<8x1xf32> to vector<8x128xf32>
    %118 = arith.subf %101, %117 : vector<8x128xf32>
    %cst_55 = arith.constant 9.99999974E-6 : f32
    %119 = vector.broadcast %cst_55 : f32 to vector<8x1xf32>
    %120 = arith.addf %116, %119 : vector<8x1xf32>
    %121 = math.rsqrt %120 : vector<8x1xf32>
    %122 = vector.broadcast %121 : vector<8x1xf32> to vector<8x128xf32>
    %123 = arith.mulf %118, %122 : vector<8x128xf32>
    %124 = vector.broadcast %103 : vector<1x128xf32> to vector<8x128xf32>
    %125 = arith.mulf %123, %124 : vector<8x128xf32>
    %126 = vector.broadcast %105 : vector<1x128xf32> to vector<8x128xf32>
    %127 = arith.addf %125, %126 : vector<8x128xf32>
    %cst_56 = arith.constant 0.000000e+00 : f32
    %128 = vector.broadcast %cst_56 : f32 to vector<8x128xf32>
    %129 = arith.maximumf %127, %128 : vector<8x128xf32>
    %130 = tpu.concatenate %100, %129 in 1 : vector<8x128xf32>, vector<8x128xf32> -> vector<8x256xf32>
    %131 = arith.truncf %130 : vector<8x256xf32> to vector<8x256xbf16>
    %c0_57 = arith.constant 0 : index
    %c0_58 = arith.constant 0 : index
    %132 = vector.load %arg10[%c0_57, %c0_58] : memref<256x256xbf16, #tpu.memory_space<vmem>>, vector<256x256xbf16>
    %cst_59 = arith.constant dense<0.000000e+00> : vector<8x256xf32>
    %133 = tpu.matmul %131, %132, %cst_59 {dimension_numbers = #tpu.dot_dimension_numbers<[1], [0], [0], [1], [0, 0, 1, 1], [], []>} : vector<8x256xbf16>, vector<256x256xbf16>, vector<8x256xf32> -> vector<8x256xf32>
    %c0_60 = arith.constant 0 : index
    %c0_61 = arith.constant 0 : index
    %134 = vector.load %arg11[%c0_60, %c0_61] : memref<1x256xf32, #tpu.memory_space<vmem>>, vector<1x256xf32>
    %135 = vector.broadcast %134 : vector<1x256xf32> to vector<8x256xf32>
    %136 = arith.addf %133, %135 : vector<8x256xf32>
    %137 = vector.extract_strided_slice %136 {offsets = [0, 0], sizes = [8, 128], strides = [1, 1]} : vector<8x256xf32> to vector<8x128xf32>
    %c0_62 = arith.constant 0 : index
    %c0_63 = arith.constant 0 : index
    %c0_64 = arith.constant 0 : index
    %138 = vector.load %arg12[%c0_62, %c0_63, %c0_64] : memref<2x1x128xf32, #tpu.memory_space<vmem>>, vector<1x1x128xf32>
    %139 = vector.shape_cast %138 : vector<1x1x128xf32> to vector<1x128xf32>
    %c0_65 = arith.constant 0 : index
    %c0_66 = arith.constant 0 : index
    %c0_67 = arith.constant 0 : index
    %140 = vector.load %arg13[%c0_65, %c0_66, %c0_67] : memref<2x1x128xf32, #tpu.memory_space<vmem>>, vector<1x1x128xf32>
    %141 = vector.shape_cast %140 : vector<1x1x128xf32> to vector<1x128xf32>
    %cst_68 = arith.constant dense<0.000000e+00> : vector<8xf32>
    %142 = vector.multi_reduction <add>, %137, %cst_68 [1] : vector<8x128xf32> to vector<8xf32>
    %143 = vector.shape_cast %142 : vector<8xf32> to vector<8x1xf32>
    %cst_69 = arith.constant 3.125000e-02 : f32
    %144 = vector.broadcast %cst_69 : f32 to vector<8x1xf32>
    %145 = arith.mulf %143, %144 : vector<8x1xf32>
    %146 = arith.mulf %137, %137 : vector<8x128xf32>
    %cst_70 = arith.constant dense<0.000000e+00> : vector<8xf32>
    %147 = vector.multi_reduction <add>, %146, %cst_70 [1] : vector<8x128xf32> to vector<8xf32>
    %148 = vector.shape_cast %147 : vector<8xf32> to vector<8x1xf32>
    %cst_71 = arith.constant 3.125000e-02 : f32
    %149 = vector.broadcast %cst_71 : f32 to vector<8x1xf32>
    %150 = arith.mulf %148, %149 : vector<8x1xf32>
    %151 = arith.mulf %145, %145 : vector<8x1xf32>
    %152 = arith.subf %150, %151 : vector<8x1xf32>
    %153 = vector.broadcast %145 : vector<8x1xf32> to vector<8x128xf32>
    %154 = arith.subf %137, %153 : vector<8x128xf32>
    %cst_72 = arith.constant 9.99999974E-6 : f32
    %155 = vector.broadcast %cst_72 : f32 to vector<8x1xf32>
    %156 = arith.addf %152, %155 : vector<8x1xf32>
    %157 = math.rsqrt %156 : vector<8x1xf32>
    %158 = vector.broadcast %157 : vector<8x1xf32> to vector<8x128xf32>
    %159 = arith.mulf %154, %158 : vector<8x128xf32>
    %160 = vector.broadcast %139 : vector<1x128xf32> to vector<8x128xf32>
    %161 = arith.mulf %159, %160 : vector<8x128xf32>
    %162 = vector.broadcast %141 : vector<1x128xf32> to vector<8x128xf32>
    %163 = arith.addf %161, %162 : vector<8x128xf32>
    %cst_73 = arith.constant 0.000000e+00 : f32
    %164 = vector.broadcast %cst_73 : f32 to vector<8x128xf32>
    %165 = arith.maximumf %163, %164 : vector<8x128xf32>
    %166 = vector.extract_strided_slice %136 {offsets = [0, 128], sizes = [8, 128], strides = [1, 1]} : vector<8x256xf32> to vector<8x128xf32>
    %c1_74 = arith.constant 1 : index
    %c0_75 = arith.constant 0 : index
    %c0_76 = arith.constant 0 : index
    %167 = vector.load %arg12[%c1_74, %c0_75, %c0_76] : memref<2x1x128xf32, #tpu.memory_space<vmem>>, vector<1x1x128xf32>
    %168 = vector.shape_cast %167 : vector<1x1x128xf32> to vector<1x128xf32>
    %c1_77 = arith.constant 1 : index
    %c0_78 = arith.constant 0 : index
    %c0_79 = arith.constant 0 : index
    %169 = vector.load %arg13[%c1_77, %c0_78, %c0_79] : memref<2x1x128xf32, #tpu.memory_space<vmem>>, vector<1x1x128xf32>
    %170 = vector.shape_cast %169 : vector<1x1x128xf32> to vector<1x128xf32>
    %cst_80 = arith.constant dense<0.000000e+00> : vector<8xf32>
    %171 = vector.multi_reduction <add>, %166, %cst_80 [1] : vector<8x128xf32> to vector<8xf32>
    %172 = vector.shape_cast %171 : vector<8xf32> to vector<8x1xf32>
    %cst_81 = arith.constant 3.125000e-02 : f32
    %173 = vector.broadcast %cst_81 : f32 to vector<8x1xf32>
    %174 = arith.mulf %172, %173 : vector<8x1xf32>
    %175 = arith.mulf %166, %166 : vector<8x128xf32>
    %cst_82 = arith.constant dense<0.000000e+00> : vector<8xf32>
    %176 = vector.multi_reduction <add>, %175, %cst_82 [1] : vector<8x128xf32> to vector<8xf32>
    %177 = vector.shape_cast %176 : vector<8xf32> to vector<8x1xf32>
    %cst_83 = arith.constant 3.125000e-02 : f32
    %178 = vector.broadcast %cst_83 : f32 to vector<8x1xf32>
    %179 = arith.mulf %177, %178 : vector<8x1xf32>
    %180 = arith.mulf %174, %174 : vector<8x1xf32>
    %181 = arith.subf %179, %180 : vector<8x1xf32>
    %182 = vector.broadcast %174 : vector<8x1xf32> to vector<8x128xf32>
    %183 = arith.subf %166, %182 : vector<8x128xf32>
    %cst_84 = arith.constant 9.99999974E-6 : f32
    %184 = vector.broadcast %cst_84 : f32 to vector<8x1xf32>
    %185 = arith.addf %181, %184 : vector<8x1xf32>
    %186 = math.rsqrt %185 : vector<8x1xf32>
    %187 = vector.broadcast %186 : vector<8x1xf32> to vector<8x128xf32>
    %188 = arith.mulf %183, %187 : vector<8x128xf32>
    %189 = vector.broadcast %168 : vector<1x128xf32> to vector<8x128xf32>
    %190 = arith.mulf %188, %189 : vector<8x128xf32>
    %191 = vector.broadcast %170 : vector<1x128xf32> to vector<8x128xf32>
    %192 = arith.addf %190, %191 : vector<8x128xf32>
    %cst_85 = arith.constant 0.000000e+00 : f32
    %193 = vector.broadcast %cst_85 : f32 to vector<8x128xf32>
    %194 = arith.maximumf %192, %193 : vector<8x128xf32>
    %c0_86 = arith.constant 0 : index
    %c0_87 = arith.constant 0 : index
    %c0_88 = arith.constant 0 : index
    %195 = vector.load %arg14[%c0_86, %c0_87, %c0_88] : memref<2x1x128xf32, #tpu.memory_space<vmem>>, vector<1x1x128xf32>
    %196 = vector.shape_cast %195 : vector<1x1x128xf32> to vector<1x128xf32>
    %197 = vector.broadcast %196 : vector<1x128xf32> to vector<8x128xf32>
    %198 = arith.mulf %165, %197 : vector<8x128xf32>
    %cst_89 = arith.constant dense<0.000000e+00> : vector<8xf32>
    %199 = vector.multi_reduction <add>, %198, %cst_89 [1] : vector<8x128xf32> to vector<8xf32>
    %200 = vector.shape_cast %199 : vector<8xf32> to vector<8x1xf32>
    %c1_90 = arith.constant 1 : index
    %c0_91 = arith.constant 0 : index
    %c0_92 = arith.constant 0 : index
    %201 = vector.load %arg14[%c1_90, %c0_91, %c0_92] : memref<2x1x128xf32, #tpu.memory_space<vmem>>, vector<1x1x128xf32>
    %202 = vector.shape_cast %201 : vector<1x1x128xf32> to vector<1x128xf32>
    %203 = vector.broadcast %202 : vector<1x128xf32> to vector<8x128xf32>
    %204 = arith.mulf %194, %203 : vector<8x128xf32>
    %cst_93 = arith.constant dense<0.000000e+00> : vector<8xf32>
    %205 = vector.multi_reduction <add>, %204, %cst_93 [1] : vector<8x128xf32> to vector<8xf32>
    %206 = vector.shape_cast %205 : vector<8xf32> to vector<8x1xf32>
    %207 = tpu.iota {dimensions = array<i32: 1>} : vector<8x2xi32>
    %c0_i32 = arith.constant 0 : i32
    %208 = vector.broadcast %c0_i32 : i32 to vector<8x2xi32>
    %209 = arith.cmpi eq, %207, %208 : vector<8x2xi32>
    %210 = vector.shape_cast %200 : vector<8x1xf32> to vector<8x1xf32>
    %211 = vector.broadcast %210 : vector<8x1xf32> to vector<8x2xf32>
    %212 = vector.shape_cast %206 : vector<8x1xf32> to vector<8x1xf32>
    %213 = vector.broadcast %212 : vector<8x1xf32> to vector<8x2xf32>
    %214 = arith.select %209, %211, %213 : vector<8x2xi1>, vector<8x2xf32>
    %c0_94 = arith.constant 0 : index
    %c0_95 = arith.constant 0 : index
    %215 = vector.load %arg15[%c0_94, %c0_95] : memref<1x2xf32, #tpu.memory_space<vmem>>, vector<1x2xf32>
    %216 = vector.broadcast %215 : vector<1x2xf32> to vector<8x2xf32>
    %217 = arith.addf %214, %216 : vector<8x2xf32>
    %c0_96 = arith.constant 0 : index
    %c0_97 = arith.constant 0 : index
    %218 = vector.load %arg16[%c0_96, %c0_97] : memref<8x2xf32, #tpu.memory_space<vmem>>, vector<8x2xf32>
    tpu.vector_store %arg16[%c0_96, %c0_97], %217 {strides = array<i32>} : memref<8x2xf32, #tpu.memory_space<vmem>>, vector<8x2xf32>,
    return
  }
  func.func @transform_0(%arg0: i32) -> (i32, i32) {
    %c0_i32 = arith.constant 0 : i32
    %c0_i32_0 = arith.constant 0 : i32
    return %arg0, %c0_i32 : i32, i32
  }
  func.func @transform_1(%arg0: i32) -> (i32, i32) {
    %c0_i32 = arith.constant 0 : i32
    %c0_i32_0 = arith.constant 0 : i32
    %c0_i32_1 = arith.constant 0 : i32
    return %c0_i32, %c0_i32_0 : i32, i32
  }
  func.func @transform_2(%arg0: i32) -> (i32, i32) {
    %c0_i32 = arith.constant 0 : i32
    %c0_i32_0 = arith.constant 0 : i32
    %c0_i32_1 = arith.constant 0 : i32
    return %c0_i32, %c0_i32_0 : i32, i32
  }
  func.func @transform_3(%arg0: i32) -> (i32, i32, i32) {
    %c0_i32 = arith.constant 0 : i32
    %c0_i32_0 = arith.constant 0 : i32
    %c0_i32_1 = arith.constant 0 : i32
    %c0_i32_2 = arith.constant 0 : i32
    return %c0_i32, %c0_i32_0, %c0_i32_1 : i32, i32, i32
  }
  func.func @transform_4(%arg0: i32) -> (i32, i32, i32) {
    %c0_i32 = arith.constant 0 : i32
    %c0_i32_0 = arith.constant 0 : i32
    %c0_i32_1 = arith.constant 0 : i32
    %c0_i32_2 = arith.constant 0 : i32
    return %c0_i32, %c0_i32_0, %c0_i32_1 : i32, i32, i32
  }
  func.func @transform_5(%arg0: i32) -> (i32, i32) {
    %c0_i32 = arith.constant 0 : i32
    %c0_i32_0 = arith.constant 0 : i32
    %c0_i32_1 = arith.constant 0 : i32
    return %c0_i32, %c0_i32_0 : i32, i32
  }
  func.func @transform_6(%arg0: i32) -> (i32, i32) {
    %c0_i32 = arith.constant 0 : i32
    %c0_i32_0 = arith.constant 0 : i32
    %c0_i32_1 = arith.constant 0 : i32
    return %c0_i32, %c0_i32_0 : i32, i32
  }
  func.func @transform_7(%arg0: i32) -> (i32, i32, i32) {
    %c0_i32 = arith.constant 0 : i32
    %c0_i32_0 = arith.constant 0 : i32
    %c0_i32_1 = arith.constant 0 : i32
    %c0_i32_2 = arith.constant 0 : i32
    return %c0_i32, %c0_i32_0, %c0_i32_1 : i32, i32, i32
  }
  func.func @transform_8(%arg0: i32) -> (i32, i32, i32) {
    %c0_i32 = arith.constant 0 : i32
    %c0_i32_0 = arith.constant 0 : i32
    %c0_i32_1 = arith.constant 0 : i32
    %c0_i32_2 = arith.constant 0 : i32
    return %c0_i32, %c0_i32_0, %c0_i32_1 : i32, i32, i32
  }
  func.func @transform_9(%arg0: i32) -> (i32, i32) {
    %c0_i32 = arith.constant 0 : i32
    %c0_i32_0 = arith.constant 0 : i32
    %c0_i32_1 = arith.constant 0 : i32
    return %c0_i32, %c0_i32_0 : i32, i32
  }
  func.func @transform_10(%arg0: i32) -> (i32, i32) {
    %c0_i32 = arith.constant 0 : i32
    %c0_i32_0 = arith.constant 0 : i32
    %c0_i32_1 = arith.constant 0 : i32
    return %c0_i32, %c0_i32_0 : i32, i32
  }
  func.func @transform_11(%arg0: i32) -> (i32, i32, i32) {
    %c0_i32 = arith.constant 0 : i32
    %c0_i32_0 = arith.constant 0 : i32
    %c0_i32_1 = arith.constant 0 : i32
    %c0_i32_2 = arith.constant 0 : i32
    return %c0_i32, %c0_i32_0, %c0_i32_1 : i32, i32, i32
  }
  func.func @transform_12(%arg0: i32) -> (i32, i32, i32) {
    %c0_i32 = arith.constant 0 : i32
    %c0_i32_0 = arith.constant 0 : i32
    %c0_i32_1 = arith.constant 0 : i32
    %c0_i32_2 = arith.constant 0 : i32
    return %c0_i32, %c0_i32_0, %c0_i32_1 : i32, i32, i32
  }
  func.func @transform_13(%arg0: i32) -> (i32, i32, i32) {
    %c0_i32 = arith.constant 0 : i32
    %c0_i32_0 = arith.constant 0 : i32
    %c0_i32_1 = arith.constant 0 : i32
    %c0_i32_2 = arith.constant 0 : i32
    return %c0_i32, %c0_i32_0, %c0_i32_1 : i32, i32, i32
  }
  func.func @transform_14(%arg0: i32) -> (i32, i32) {
    %c0_i32 = arith.constant 0 : i32
    %c0_i32_0 = arith.constant 0 : i32
    %c0_i32_1 = arith.constant 0 : i32
    return %c0_i32, %c0_i32_0 : i32, i32
  }
  func.func @transform_15(%arg0: i32) -> (i32, i32) {
    %c0_i32 = arith.constant 0 : i32
    %c0_i32_0 = arith.constant 0 : i32
    return %arg0, %c0_i32 : i32, i32
  }
}

</mosaic_0001>

<bundles_post_ra>
// kernel: tpu_custom_call.1
= control target key start
LH: loop header
LB: loop body
LE: loop exit
PB: predicated region body
PF: predicated region fallthrough
CT: control target
= control target key end

     0   :  { %s1446_s0 = inlined_call_operand.hbm [shape: f32[8,32], index: 0, kind: input, shape index: {}]   ;;  %s1447_s1 = inlined_call_operand.hbm [shape: bf16[32,256], index: 1, kind: input, shape index: {}]   ;;  %s1448_s2 = inlined_call_operand.vmem [shape: f32[1,256], index: 2, kind: input, shape index: {}]   ;;  %s1449_s3 = inlined_call_operand.vmem [shape: f32[2,1,128], index: 3, kind: input, shape index: {}]   ;;  %s1450_s4 = inlined_call_operand.vmem [shape: f32[2,1,128], index: 4, kind: input, shape index: {}]   ;;  %s1451_s5 = inlined_call_operand.hbm [shape: bf16[256,256], index: 5, kind: input, shape index: {}]   ;;  %s1452_s6 = inlined_call_operand.vmem [shape: f32[1,256], index: 6, kind: input, shape index: {}]   ;;  %s1453_s7 = inlined_call_operand.vmem [shape: f32[2,1,128], index: 7, kind: input, shape index: {}]   ;;  %s1454_s8 = inlined_call_operand.vmem [shape: f32[2,1,128], index: 8, kind: input, shape index: {}]   ;;  %s1455_s9 = inlined_call_operand.hbm [shape: bf16[256,256], index: 9, kind: input, shape index: {}]   ;;  %s1456_s10 = inlined_call_operand.vmem [shape: f32[1,256], index: 10, kind: input, shape index: {}]   ;;  %s1457_s11 = inlined_call_operand.vmem [shape: f32[2,1,128], index: 11, kind: input, shape index: {}]   ;;  %s1458_s12 = inlined_call_operand.vmem [shape: f32[2,1,128], index: 12, kind: input, shape index: {}]   ;;  %s1459_s13 = inlined_call_operand.vmem [shape: f32[2,1,128], index: 13, kind: input, shape index: {}]   ;;  %s1460_s14 = inlined_call_operand.vmem [shape: f32[1,2], index: 14, kind: input, shape index: {}]   ;;  %s1461_s15 = inlined_call_operand.vmem [shape: f32[8,2], index: 15, kind: output, shape index: {}]  }
   0x1   :  { %1462 = sst [smem:[#allocation12_spill]] %s1461_s15 }
   0x2   :  { %20 = vsyncpa [#allocation3], 0 }
   0x3   :  { %21 = vsyncpa [#allocation5], 0 }
   0x4   :  { %22 = vsyncpa [#allocation8], 0  ;;  %s1215_s18 = smov [#allocation4]   ;;  %s1121_s22 = scalar_lea.hbm %s1447_s1, 512 }
   0x5   :  { %s38_s19 = sshll.u32 %s1215_s18, 4  ;;  %p1122_p0 = scmp.ne.s32.totalorder %s1447_s1, %s1121_s22  ;;  %s39_s19 = int_to_ptr.vmem [resolvable:$true] %s38_s19 }
   0x6   :  { %p1125_p1 = scmp.lt.u32.totalorder %s1121_s22, %s1447_s1 }
   0x8   :  { %p1127_p2 = pnand %p1125_p1, %p1122_p0 }
   0xa   :  { %1130 = shalt.err (!%p1127_p2)
}
   0xb   :  { %s1131_s27 = scalar_lea.vmem %s39_s19, 512  ;;  %p1136_p4 = scmp.lt.s32.totalorder %s39_s19, %s39_s19 }
   0xc   :  { %p1132_p3 = scmp.ne.s32.totalorder %s39_s19, %s1131_s27  ;;  %p1137_p5 = scmp.lt.s32.totalorder %s1131_s27, %s1131_s27 }
   0xe   :  { %p1138_p6 = por %p1137_p5, %p1136_p4 }
  0x10   :  { %p1139_p7 = pnand %p1138_p6, %p1132_p3 }
  0x12   :  { %1142 = shalt.err (!%p1139_p7)
}
  0x13   :  { %s1216_s28 = smov 128   ;;  %s1217_s29 = smov 8  }
  0x14   :  { %44 = dma.hbm_to_vmem [thread:$0]  %s1447_s1, 512, %s39_s19, [#allocation5], %s1216_s28, %s1216_s28, %s1217_s29  }
  0x15   :  { %s1218_s17 = smov [#allocation2]   ;;  %s1219_s20 = smov [#allocation6]  }
  0x16   :  { %s29_s18 = sshll.u32 %s1218_s17, 4  ;;  %s56_s21 = sshll.u32 %s1219_s20, 4  ;;  %s30_s18 = int_to_ptr.vmem [resolvable:$true] %s29_s18  ;;  %s57_s21 = int_to_ptr.vmem [resolvable:$true] %s56_s21 }
  0x17   :  { %s1143_s24 = scalar_lea.hbm %s1446_s0, 128 }
  0x18   :  { %p1144_p8 = scmp.ne.s32.totalorder %s1446_s0, %s1143_s24  ;;  %p1147_p9 = scmp.lt.u32.totalorder %s1143_s24, %s1446_s0 }
  0x1a   :  { %p1149_p10 = pnand %p1147_p9, %p1144_p8 }
  0x1c   :  { %1152 = shalt.err (!%p1149_p10)
}
  0x1d   :  { %s1153_s1 = scalar_lea.vmem %s30_s18, 128  ;;  %p1158_p12 = scmp.lt.s32.totalorder %s30_s18, %s30_s18 }
  0x1e   :  { %p1154_p11 = scmp.ne.s32.totalorder %s30_s18, %s1153_s1  ;;  %p1159_p13 = scmp.lt.s32.totalorder %s1153_s1, %s1153_s1 }
  0x20   :  { %p1160_p0 = por %p1159_p13, %p1158_p12 }
  0x22   :  { %p1161_p1 = pnand %p1160_p0, %p1154_p11 }
  0x24   :  { %1164 = shalt.err (!%p1161_p1)
}
  0x25   :  { %32 = dma.hbm_to_vmem [thread:$0]  %s1446_s0, 128, %s30_s18, [#allocation3]  }
  0x26   :  { %s1165_s20 = scalar_lea.hbm %s1451_s5, 4096 }
  0x27   :  { %p1166_p2 = scmp.ne.s32.totalorder %s1451_s5, %s1165_s20  ;;  %p1169_p3 = scmp.lt.u32.totalorder %s1165_s20, %s1451_s5 }
  0x29   :  { %p1171_p4 = pnand %p1169_p3, %p1166_p2 }
  0x2b   :  { %1174 = shalt.err (!%p1171_p4)
}
  0x2c   :  { %s1175_s25 = scalar_lea.vmem %s57_s21, 4096  ;;  %p1180_p6 = scmp.lt.s32.totalorder %s57_s21, %s57_s21 }
  0x2d   :  { %p1176_p5 = scmp.ne.s32.totalorder %s57_s21, %s1175_s25  ;;  %p1181_p7 = scmp.lt.s32.totalorder %s1175_s25, %s1175_s25 }
  0x2f   :  { %p1182_p8 = por %p1181_p7, %p1180_p6 }
  0x31   :  { %p1183_p9 = pnand %p1182_p8, %p1176_p5 }
  0x33   :  { %1186 = shalt.err (!%p1183_p9)
}
  0x34   :  { %62 = dma.hbm_to_vmem [thread:$0]  %s1451_s5, 4096, %s57_s21, [#allocation5], %s1216_s28, %s1216_s28, %s1217_s29  }
  0x35   :  { %s1220_s26 = smov [#allocation7]   ;;  %s1187_s30 = scalar_lea.hbm %s1455_s9, 4096 }
  0x36   :  { %s74_s27 = sshll.u32 %s1220_s26, 4  ;;  %p1188_p10 = scmp.ne.s32.totalorder %s1455_s9, %s1187_s30  ;;  %s75_s27 = int_to_ptr.vmem [resolvable:$true] %s74_s27 }
  0x37   :  { %p1191_p11 = scmp.lt.u32.totalorder %s1187_s30, %s1455_s9 }
  0x39   :  { %p1193_p12 = pnand %p1191_p11, %p1188_p10 }
  0x3b   :  { %1196 = shalt.err (!%p1193_p12)
}
  0x3c   :  { %s1197_s22 = scalar_lea.vmem %s75_s27, 4096  ;;  %p1202_p0 = scmp.lt.s32.totalorder %s75_s27, %s75_s27 }
  0x3d   :  { %p1198_p13 = scmp.ne.s32.totalorder %s75_s27, %s1197_s22  ;;  %p1203_p1 = scmp.lt.s32.totalorder %s1197_s22, %s1197_s22 }
  0x3f   :  { %p1204_p2 = por %p1203_p1, %p1202_p0 }
  0x41   :  { %p1205_p3 = pnand %p1204_p2, %p1198_p13 }
  0x43   :  { %1208 = shalt.err (!%p1205_p3)
}
  0x44   :  { %80 = dma.hbm_to_vmem [thread:$0]  %s1455_s9, 4096, %s75_s27, [#allocation8], %s1216_s28, %s1216_s28, %s1217_s29  }
  0x45   :  { %1209 = dma.done.wait [#allocation3], 128  }
  0x46   :  { %1210 = vsyncadd [#allocation3], 4294967168 }
  0x47   :  { %1211 = dma.done.wait [#allocation5], 4608  }
  0x48   :  { %1212 = vsyncadd [#allocation5], 4294962688 }
  0x49   :  { %1213 = dma.done.wait [#allocation8], 4096  }
  0x4a   :  { %1214 = vsyncadd [#allocation8], 4294963200  ;;  %v1221_v0 = vmov 0   ;;  %v1007_v1 = vld [vmem:[#allocation4 + $0x4] ss:$8 sps:$4 sm:$0xff]   ;;  %v104_v5 = vld [vmem:[#allocation2] sm:$0xff]  ;;  %v112_v23 = vlaneseq }
  0x4b   :  { %178 = vmatprep.mubr.bf16.mxu0 %v1221_v0  ;;  %v1009_v2 = vld [vmem:[#allocation4] ss:$8 sps:$4 sm:$0xff]   ;;  %146 = vmatprep.subr.bf16.mxu0 %v1007_v1  ;;  %v1010_v3 = vld [vmem:[#allocation4 + $0x14] ss:$8 sps:$4 sm:$0xff]   ;;  %v1012_v4 = vld [vmem:[#allocation4 + $0x10] ss:$8 sps:$4 sm:$0xff]   ;;  %v105_v6 = vpack.c.bf16 %v104_v5, %v104_v5 }
  0x4c   :  { %147 = vmatpush1.bf16.msra.mxu0 %v1009_v2  ;;  %vm142_vm0 = vcmask 261120   ;;  %v1013_v7 = vld [vmem:[#allocation6 + $0x4] ss:$8 sps:$4 sm:$0xff]   ;;  %v1015_v8 = vld [vmem:[#allocation6] ss:$8 sps:$4 sm:$0xff]   ;;  %v113_v24 = vshrl.u32 %v112_v23, 7 }
  0x4d   :  { %148 = vmatprep.subr.bf16.mxu0 %v1010_v3  ;;  %v1016_v9 = vld [vmem:[#allocation6 + $0x14] ss:$8 sps:$4 sm:$0xff]   ;;  %455 = vmatprep.subr.bf16.mxu1 %v1013_v7  ;;  %v1018_v10 = vld [vmem:[#allocation6 + $0x10] ss:$8 sps:$4 sm:$0xff]   ;;  %v1019_v11 = vld [vmem:[#allocation6 + $0x24] ss:$8 sps:$4 sm:$0xff]  }
  0x4e   :  { %456 = vmatpush1.bf16.msra.mxu1 %v1015_v8  ;;  %v1021_v12 = vld [vmem:[#allocation6 + $0x20] ss:$8 sps:$4 sm:$0xff]   ;;  %v1022_v13 = vld [vmem:[#allocation6 + $0x34] ss:$8 sps:$4 sm:$0xff]   ;;  %v1024_v14 = vld [vmem:[#allocation6 + $0x30] ss:$8 sps:$4 sm:$0xff]  }
  0x4f   :  { %457 = vmatprep.subr.bf16.mxu1 %v1016_v9  ;;  %v1025_v15 = vld [vmem:[#allocation6 + $0x44] ss:$8 sps:$4 sm:$0xff]   ;;  %v1027_v16 = vld [vmem:[#allocation6 + $0x40] ss:$8 sps:$4 sm:$0xff]   ;;  %v1028_v17 = vld [vmem:[#allocation6 + $0x54] ss:$8 sps:$4 sm:$0xff]  }
  0x50   :  { %149 = vmatpush1.bf16.msra.mxu0 %v1012_v4  ;;  %v1030_v18 = vld [vmem:[#allocation6 + $0x50] ss:$8 sps:$4 sm:$0xff]   ;;  %v1031_v19 = vld [vmem:[#allocation6 + $0x64] ss:$8 sps:$4 sm:$0xff]   ;;  %v1033_v20 = vld [vmem:[#allocation6 + $0x60] ss:$8 sps:$4 sm:$0xff]  }
  0x51   :  { %v1034_v21 = vld [vmem:[#allocation6 + $0x74] ss:$8 sps:$4 sm:$0xff]   ;;  %v1036_v22 = vld [vmem:[#allocation6 + $0x70] ss:$8 sps:$4 sm:$0xff]   ;;  %v1360_v25 = vsub.s32 1, %v113_v24  ;;  %v1365_v27 = vsub.s32 0, %v113_v24 }
  0x52   :  { %458 = vmatpush1.bf16.msra.mxu1 %v1018_v10  ;;  %v110_v26 = vld [vmem:[%s1448_s2] sm:$0x3]  ;;  %v1037_v38 = vld [vmem:[#allocation6 + $0x84] ss:$8 sps:$4 sm:$0xff]   ;;  %v1039_v39 = vld [vmem:[#allocation6 + $0x80] ss:$8 sps:$4 sm:$0xff]  }
  0x53   :  { %913 = vmatmul.mubr.msk.bf16.vlgmr.msra.gmra.mrb[0].mxu0 %vm142_vm0, %v105_v6  ;;  %459 = vmatprep.subr.bf16.mxu1 %v1019_v11  ;;  %v119_v28 = vrot.slane %v110_v26, %v1360_v25  ;;  %v115_v29 = vrot.slane %v110_v26, %v1365_v27  ;;  %v1040_v40 = vld [vmem:[#allocation6 + $0x94] ss:$8 sps:$4 sm:$0xff]   ;;  %v1042_v41 = vld [vmem:[#allocation6 + $0x90] ss:$8 sps:$4 sm:$0xff]   ;;  %v1043_v42 = vld [vmem:[#allocation6 + $0xa4] ss:$8 sps:$4 sm:$0xff]  }
  0x54   :  { %v1045_v43 = vld [vmem:[#allocation6 + $0xa0] ss:$8 sps:$4 sm:$0xff]   ;;  %v1046_v44 = vld [vmem:[#allocation6 + $0xb4] ss:$8 sps:$4 sm:$0xff]   ;;  %v1048_v45 = vld [vmem:[#allocation6 + $0xb0] ss:$8 sps:$4 sm:$0xff]  }
  0x55   :  { %v1049_v46 = vld [vmem:[#allocation6 + $0xc4] ss:$8 sps:$4 sm:$0xff]   ;;  %v1051_v47 = vld [vmem:[#allocation6 + $0xc0] ss:$8 sps:$4 sm:$0xff]   ;;  %v1052_v48 = vld [vmem:[#allocation6 + $0xd4] ss:$8 sps:$4 sm:$0xff]  }
  0x56   :  { %460 = vmatpush1.bf16.msra.mxu1 %v1021_v12  ;;  %v1054_v49 = vld [vmem:[#allocation6 + $0xd0] ss:$8 sps:$4 sm:$0xff]   ;;  %v1055_v50 = vld [vmem:[#allocation6 + $0xe4] ss:$8 sps:$4 sm:$0xff]   ;;  %v1057_v51 = vld [vmem:[#allocation6 + $0xe0] ss:$8 sps:$4 sm:$0xff]  }
  0x57   :  { %461 = vmatprep.subr.bf16.mxu1 %v1022_v13  ;;  %v1058_v52 = vld [vmem:[#allocation6 + $0xf4] ss:$8 sps:$4 sm:$0xff]   ;;  %v1060_v53 = vld [vmem:[#allocation6 + $0xf0] ss:$8 sps:$4 sm:$0xff]   ;;  %v1063_v24 = vld [vmem:[#allocation7 + $0x4] ss:$8 sps:$4 sm:$0xff]  }
  0x58   :  { %v918_v6 = vld [vmem:[%s1449_s3 + $0x1] ss:$0 sm:$0xff]  ;;  %v914_v12 = vld [vmem:[%s1449_s3] ss:$0 sm:$0xff]  ;;  %v1066_v26 = vld [vmem:[#allocation7 + $0x14] ss:$8 sps:$4 sm:$0xff]   ;;  %764 = vmatprep.subr.bf16.mxu0 %v1063_v24 }
  0x59   :  { %v919_v8 = vld [vmem:[%s1450_s4 + $0x1] ss:$0 sm:$0xff]  ;;  %vm900_vm2 = vcmask 15360  }
  0x5a   :  { %462 = vmatpush1.bf16.msra.mxu1 %v1024_v14  ;;  %v956_v24 = vld [vmem:[%s1453_s7 + $0x1] ss:$0 sm:$0xff] }
  0x5b   :  { %463 = vmatprep.subr.bf16.mxu1 %v1025_v15  ;;  %v915_v15 = vld [vmem:[%s1450_s4] ss:$0 sm:$0xff] }
  0x5e   :  { %464 = vmatpush1.bf16.msra.mxu1 %v1027_v16 }
  0x5f   :  { %465 = vmatprep.subr.bf16.mxu1 %v1028_v17 }
  0x62   :  { %466 = vmatpush1.bf16.msra.mxu1 %v1030_v18 }
  0x63   :  { %467 = vmatprep.subr.bf16.mxu1 %v1031_v19 }
  0x66   :  { %468 = vmatpush1.bf16.msra.mxu1 %v1033_v20 }
  0x67   :  { %469 = vmatprep.subr.bf16.mxu1 %v1034_v21 }
  0x6a   :  { %470 = vmatpush1.bf16.msra.mxu1 %v1036_v22  ;;  %v1061_v22 = vld [vmem:[#allocation7] ss:$8 sps:$4 sm:$0xff]  }
  0x6b   :  { %471 = vmatprep.subr.bf16.mxu1 %v1037_v38  ;;  %765 = vmatpush1.bf16.msra.mxu0 %v1061_v22  ;;  %v1079_v38 = vld [vmem:[#allocation7 + $0x60] ss:$8 sps:$4 sm:$0xff]  }
  0x6c   :  { %766 = vmatprep.subr.bf16.mxu0 %v1066_v26 }
  0x6e   :  { %472 = vmatpush1.bf16.msra.mxu1 %v1039_v39  ;;  %v1084_v39 = vld [vmem:[#allocation7 + $0x74] ss:$8 sps:$4 sm:$0xff]  }
  0x6f   :  { %473 = vmatprep.subr.bf16.mxu1 %v1040_v40  ;;  %v1082_v40 = vld [vmem:[#allocation7 + $0x70] ss:$8 sps:$4 sm:$0xff]  }
  0x72   :  { %474 = vmatpush1.bf16.msra.mxu1 %v1042_v41  ;;  %v283_v41 = vld [vmem:[%s1452_s6] sm:$0x3] }
  0x73   :  { %475 = vmatprep.subr.bf16.mxu1 %v1043_v42  ;;  %v288_v42 = vrot.slane %v283_v41, %v1365_v27 }
  0x76   :  { %476 = vmatpush1.bf16.msra.mxu1 %v1045_v43  ;;  %v292_v43 = vrot.slane %v283_v41, %v1360_v25 }
  0x77   :  { %477 = vmatprep.subr.bf16.mxu1 %v1046_v44 }
  0x7a   :  { %478 = vmatpush1.bf16.msra.mxu1 %v1048_v45 }
  0x7b   :  { %479 = vmatprep.subr.bf16.mxu1 %v1049_v46 }
  0x7e   :  { %480 = vmatpush1.bf16.msra.mxu1 %v1051_v47 }
  0x7f   :  { %481 = vmatprep.subr.bf16.mxu1 %v1052_v48 }
  0x82   :  { %482 = vmatpush1.bf16.msra.mxu1 %v1054_v49 }
  0x83   :  { %483 = vmatprep.subr.bf16.mxu1 %v1055_v50 }
  0x86   :  { %484 = vmatpush1.bf16.msra.mxu1 %v1057_v51 }
  0x87   :  { %485 = vmatprep.subr.bf16.mxu1 %v1058_v52  ;;  %v1087_v52 = vld [vmem:[#allocation7 + $0x84] ss:$8 sps:$4 sm:$0xff]  }
  0x8a   :  { %486 = vmatpush1.bf16.msra.mxu1 %v1060_v53  ;;  %v1085_v53 = vld [vmem:[#allocation7 + $0x80] ss:$8 sps:$4 sm:$0xff]  }
 0x126   :  { %v180_v30 = vpop.f32.mrb[0].mxu0 }
 0x127   :  { %v182_v31 = vpop.f32.mrb[1].mxu0  ;;  %v1369_v35 = vadd.f32 %v180_v30, %v115_v29  ;;  %v1069_v29 = vld [vmem:[#allocation7 + $0x24] ss:$8 sps:$4 sm:$0xff]   ;;  %v1067_v30 = vld [vmem:[#allocation7 + $0x20] ss:$8 sps:$4 sm:$0xff]  }
 0x128   :  { %v183_v32 = vadd.f32 %v182_v31, %v119_v28  ;;  %v184_v33 = vpop.f32.mrb[2].mxu0  ;;  %v1064_v28 = vld [vmem:[#allocation7 + $0x10] ss:$8 sps:$4 sm:$0xff]   ;;  %v1072_v31 = vld [vmem:[#allocation7 + $0x34] ss:$8 sps:$4 sm:$0xff]  }
 0x129   :  { %v185_v34 = vpop.f32.mrb[3].mxu0  ;;  %v192_v37 = vmul.f32 %v1369_v35, %v1369_v35  ;;  %767 = vmatpush1.bf16.msra.mxu0 %v1064_v28  ;;  %v1075_v33 = vld [vmem:[#allocation7 + $0x44] ss:$8 sps:$4 sm:$0xff]  }
 0x12a   :  { %221 = vadd.xlane.f32.xlu0 %v183_v32  ;;  %v224_v36 = vmul.f32 %v183_v32, %v183_v32  ;;  %768 = vmatprep.subr.bf16.mxu0 %v1069_v29  ;;  %v1073_v34 = vld [vmem:[#allocation7 + $0x40] ss:$8 sps:$4 sm:$0xff]   ;;  %v953_v29 = vld [vmem:[%s1454_s8] ss:$0 sm:$0xff] }
 0x12c   :  { %225 = vadd.xlane.f32.xlu1 %v224_v36  ;;  %v1076_v36 = vld [vmem:[#allocation7 + $0x50] ss:$8 sps:$4 sm:$0xff]  }
 0x12d   :  { %769 = vmatpush1.bf16.msra.mxu0 %v1067_v30  ;;  %v957_v30 = vld [vmem:[%s1454_s8 + $0x1] ss:$0 sm:$0xff] }
 0x12e   :  { %189 = vadd.xlane.f32.xlu0 %v1369_v35  ;;  %770 = vmatprep.subr.bf16.mxu0 %v1072_v31 }
 0x130   :  { %193 = vadd.xlane.f32.xlu1 %v192_v37  ;;  %v1081_v37 = vld [vmem:[#allocation7 + $0x64] ss:$8 sps:$4 sm:$0xff]  }
 0x1b7   :  { %v222_v54 = vpop.xlane.xlu0 %221 }
 0x1b8   :  { %v223_v55 = vmul.f32 0.03125, %v222_v54  ;;  %v1090_v54 = vld [vmem:[#allocation7 + $0x94] ss:$8 sps:$4 sm:$0xff]  }
 0x1b9   :  { %v226_v56 = vpop.xlane.xlu1 %225 }
 0x1ba   :  { %v228_v57 = vmul.f32 %v223_v55, %v223_v55  ;;  %v227_v58 = vmul.f32 0.03125, %v226_v56  ;;  %v230_v4 = vsub.f32 %v183_v32, %v223_v55  ;;  %v1070_v32 = vld [vmem:[#allocation7 + $0x30] ss:$8 sps:$4 sm:$0xff]   ;;  %v1093_v56 = vld [vmem:[#allocation7 + $0xa4] ss:$8 sps:$4 sm:$0xff]  }
 0x1bb   :  { %v190_v59 = vpop.xlane.xlu0 %189  ;;  %771 = vmatpush1.bf16.msra.mxu0 %v1070_v32  ;;  %v1088_v55 = vld [vmem:[#allocation7 + $0x90] ss:$8 sps:$4 sm:$0xff]  }
 0x1bc   :  { %v229_v60 = vsub.f32 %v227_v58, %v228_v57  ;;  %v191_v61 = vmul.f32 0.03125, %v190_v59  ;;  %772 = vmatprep.subr.bf16.mxu0 %v1075_v33  ;;  %v1091_v57 = vld [vmem:[#allocation7 + $0xa0] ss:$8 sps:$4 sm:$0xff]   ;;  %v1094_v58 = vld [vmem:[#allocation7 + $0xb0] ss:$8 sps:$4 sm:$0xff]  }
 0x1bd   :  { %v194_v62 = vpop.xlane.xlu1 %193  ;;  %v1096_v59 = vld [vmem:[#allocation7 + $0xb4] ss:$8 sps:$4 sm:$0xff]  }
 0x1be   :  { %v231_v63 = vadd.f32 1e-05, %v229_v60  ;;  %v196_v0 = vmul.f32 %v191_v61, %v191_v61  ;;  %v195_v1 = vmul.f32 0.03125, %v194_v62  ;;  %v198_v9 = vsub.f32 %v1369_v35, %v191_v61  ;;  %v1078_v35 = vld [vmem:[#allocation7 + $0x54] ss:$8 sps:$4 sm:$0xff]  }
 0x1bf   :  { %773 = vmatpush1.bf16.msra.mxu0 %v1073_v34  ;;  %v1099_v60 = vld [vmem:[#allocation7 + $0xc4] ss:$8 sps:$4 sm:$0xff]   ;;  %v1097_v61 = vld [vmem:[#allocation7 + $0xc0] ss:$8 sps:$4 sm:$0xff]   ;;  %v1102_v62 = vld [vmem:[#allocation7 + $0xd4] ss:$8 sps:$4 sm:$0xff]  }
 0x1c0   :  { %1109 = vrsqrt.f32 %v231_v63  ;;  %v197_v2 = vsub.f32 %v195_v1, %v196_v0  ;;  %774 = vmatprep.subr.bf16.mxu0 %v1078_v35  ;;  %v1100_v63 = vld [vmem:[#allocation7 + $0xd0] ss:$8 sps:$4 sm:$0xff]   ;;  %v1105_v0 = vld [vmem:[#allocation7 + $0xe4] ss:$8 sps:$4 sm:$0xff]   ;;  %v1103_v1 = vld [vmem:[#allocation7 + $0xe0] ss:$8 sps:$4 sm:$0xff]  }
 0x1c2   :  { %v199_v3 = vadd.f32 1e-05, %v197_v2  ;;  %v1108_v2 = vld [vmem:[#allocation7 + $0xf4] ss:$8 sps:$4 sm:$0xff]  }
 0x1c3   :  { %775 = vmatpush1.bf16.msra.mxu0 %v1076_v36 }
 0x1c4   :  { %1111 = vrsqrt.f32 %v199_v3  ;;  %776 = vmatprep.subr.bf16.mxu0 %v1081_v37  ;;  %v1106_v3 = vld [vmem:[#allocation7 + $0xf0] ss:$8 sps:$4 sm:$0xff]  }
 0x1c7   :  { %777 = vmatpush1.bf16.msra.mxu0 %v1079_v38 }
 0x1c8   :  { %778 = vmatprep.subr.bf16.mxu0 %v1084_v39  ;;  %v592_v39 = vld [vmem:[%s1456_s10] sm:$0x3] }
 0x1c9   :  { %v601_v41 = vrot.slane %v592_v39, %v1360_v25 }
 0x1ca   :  { %v1110_v5 = vpop.eup %1109 }
 0x1cb   :  { %v233_v7 = vmul.f32 %v1110_v5, %v230_v4  ;;  %779 = vmatpush1.bf16.msra.mxu0 %v1082_v40  ;;  %v597_v40 = vrot.slane %v592_v39, %v1365_v27 }
 0x1cc   :  { %780 = vmatprep.subr.bf16.mxu0 %v1087_v52 }
 0x1cd   :  { %v240_v10 = vmul.f32 %v918_v6, %v233_v7 }
 0x1ce   :  { %v1112_v11 = vpop.eup %1111 }
 0x1cf   :  { %v247_v13 = vadd.f32 %v919_v8, %v240_v10  ;;  %v201_v14 = vmul.f32 %v1112_v11, %v198_v9  ;;  %781 = vmatpush1.bf16.msra.mxu0 %v1085_v53 }
 0x1d0   :  { %782 = vmatprep.subr.bf16.mxu0 %v1090_v54 }
 0x1d1   :  { %v248_v16 = vmax.f32 %v247_v13, 0.0  ;;  %v208_v17 = vmul.f32 %v914_v12, %v201_v14 }
 0x1d3   :  { %v250_v18 = vpack.c.bf16 %v248_v16, %v248_v16  ;;  %v215_v19 = vadd.f32 %v915_v15, %v208_v17  ;;  %783 = vmatpush1.bf16.msra.mxu0 %v1088_v55 }
 0x1d4   :  { %784 = vmatprep.subr.bf16.mxu0 %v1093_v56 }
 0x1d5   :  { %487 = vmatprep.mubr.bf16.mxu1 %v250_v18  ;;  %v216_v20 = vmax.f32 %v215_v19, 0.0 }
 0x1d7   :  { %v249_v21 = vpack.c.bf16 %v216_v20, %v216_v20  ;;  %785 = vmatpush1.bf16.msra.mxu0 %v1091_v57 }
 0x1d8   :  { %786 = vmatprep.subr.bf16.mxu0 %v1096_v59 }
 0x1d9   :  { %488 = vmatmul.mubr.bf16.vlgmr.msra.gmra.mrb[0].mxu1 %v249_v21  ;;  %v952_v21 = vld [vmem:[%s1453_s7] ss:$0 sm:$0xff] }
 0x1db   :  { %787 = vmatpush1.bf16.msra.mxu0 %v1094_v58 }
 0x1dc   :  { %788 = vmatprep.subr.bf16.mxu0 %v1099_v60 }
 0x1df   :  { %789 = vmatpush1.bf16.msra.mxu0 %v1097_v61 }
 0x1e0   :  { %790 = vmatprep.subr.bf16.mxu0 %v1102_v62 }
 0x1e3   :  { %791 = vmatpush1.bf16.msra.mxu0 %v1100_v63 }
 0x1e4   :  { %792 = vmatprep.subr.bf16.mxu0 %v1105_v0 }
 0x1e7   :  { %793 = vmatpush1.bf16.msra.mxu0 %v1103_v1  ;;  %v990_v1 = vld [vmem:[%s1457_s11] ss:$0 sm:$0xff] }
 0x1e8   :  { %794 = vmatprep.subr.bf16.mxu0 %v1108_v2 }
 0x1eb   :  { %795 = vmatpush1.bf16.msra.mxu0 %v1106_v3 }
 0x2ac   :  { %v489_v44 = vpop.f32.mrb[0].mxu1 }
 0x2ad   :  { %v1392_v45 = vadd.f32 %v489_v44, %v288_v42  ;;  %v491_v46 = vpop.f32.mrb[1].mxu1 }
 0x2ae   :  { %v1394_v47 = vadd.f32 %v491_v46, %v292_v43  ;;  %v493_v48 = vpop.f32.mrb[2].mxu1 }
 0x2af   :  { %v494_v49 = vpop.f32.mrb[3].mxu1  ;;  %498 = vadd.xlane.f32.xlu1 %v1392_v45  ;;  %v501_v50 = vmul.f32 %v1392_v45, %v1392_v45 }
 0x2b0   :  { %530 = vadd.xlane.f32.xlu0 %v1394_v47  ;;  %v533_v51 = vmul.f32 %v1394_v47, %v1394_v47 }
 0x2b3   :  { %502 = vadd.xlane.f32.xlu1 %v501_v50 }
 0x2b4   :  { %534 = vadd.xlane.f32.xlu0 %v533_v51 }
 0x33c   :  { %v499_v4 = vpop.xlane.xlu1 %498 }
 0x33d   :  { %v500_v5 = vmul.f32 0.03125, %v499_v4  ;;  %v531_v6 = vpop.xlane.xlu0 %530  ;;  %v994_v4 = vld [vmem:[%s1457_s11 + $0x1] ss:$0 sm:$0xff] }
 0x33e   :  { %v532_v7 = vmul.f32 0.03125, %v531_v6 }
 0x33f   :  { %v505_v9 = vmul.f32 %v500_v5, %v500_v5  ;;  %v507_v18 = vsub.f32 %v1392_v45, %v500_v5  ;;  %v991_v5 = vld [vmem:[%s1458_s12] ss:$0 sm:$0xff] }
 0x340   :  { %v503_v8 = vpop.xlane.xlu1 %502  ;;  %v537_v12 = vmul.f32 %v532_v7, %v532_v7  ;;  %v539_v20 = vsub.f32 %v1394_v47, %v532_v7 }
 0x341   :  { %v504_v10 = vmul.f32 0.03125, %v503_v8  ;;  %v535_v11 = vpop.xlane.xlu0 %534  ;;  %v995_v8 = vld [vmem:[%s1458_s12 + $0x1] ss:$0 sm:$0xff] }
 0x342   :  { %v536_v13 = vmul.f32 0.03125, %v535_v11  ;;  %v996_v11 = vld [vmem:[%s1459_s13] ss:$0 sm:$0xff] }
 0x343   :  { %v506_v14 = vsub.f32 %v504_v10, %v505_v9 }
 0x344   :  { %v538_v15 = vsub.f32 %v536_v13, %v537_v12 }
 0x345   :  { %v508_v16 = vadd.f32 1e-05, %v506_v14  ;;  %v998_v14 = vld [vmem:[%s1459_s13 + $0x1] ss:$0 sm:$0xff]  ;;  %s1463_s13 = sld [smem:[#allocation12_spill]] }
 0x346   :  { %v540_v17 = vadd.f32 1e-05, %v538_v15 }
 0x347   :  { %1113 = vrsqrt.f32 %v508_v16 }
 0x348   :  { %1115 = vrsqrt.f32 %v540_v17 }
 0x351   :  { %v1114_v19 = vpop.eup %1113 }
 0x352   :  { %v1116_v22 = vpop.eup %1115  ;;  %v510_v26 = vmul.f32 %v1114_v19, %v507_v18  ;;  %v889_v18 = vand.u32 127, %v112_v23 }
 0x353   :  { %v542_v28 = vmul.f32 %v1116_v22, %v539_v20  ;;  %v999_v20 = vld [vmem:[%s1460_s14] ss:$0 sm:$0xff] }
 0x354   :  { %v517_v31 = vmul.f32 %v952_v21, %v510_v26  ;;  %vm890_vm1 = vcmp.eq.s32.totalorder %v889_v18, 0 }
 0x355   :  { %v549_v32 = vmul.f32 %v956_v24, %v542_v28 }
 0x356   :  { %v524_v33 = vadd.f32 %v953_v29, %v517_v31 }
 0x357   :  { %v556_v34 = vadd.f32 %v957_v30, %v549_v32 }
 0x358   :  { %v525_v35 = vmax.f32 %v524_v33, 0.0 }
 0x359   :  { %v557_v36 = vmax.f32 %v556_v34, 0.0 }
 0x35a   :  { %v558_v38 = vpack.c.bf16 %v525_v35, %v525_v35 }
 0x35b   :  { %v559_v37 = vpack.c.bf16 %v557_v36, %v557_v36 }
 0x35d   :  { %796 = vmatprep.mubr.bf16.mxu0 %v559_v37 }
 0x35e   :  { %797 = vmatmul.mubr.bf16.vlgmr.msra.gmra.mrb[4].mxu0 %v558_v38 }
 0x431   :  { %v798_v42 = vpop.f32.mrb[4].mxu0 }
 0x432   :  { %v799_v43 = vadd.f32 %v798_v42, %v597_v40  ;;  %v800_v44 = vpop.f32.mrb[5].mxu0 }
 0x433   :  { %v801_v45 = vadd.f32 %v800_v44, %v601_v41  ;;  %v802_v46 = vpop.f32.mrb[6].mxu0 }
 0x434   :  { %v803_v47 = vpop.f32.mrb[7].mxu0  ;;  %807 = vadd.xlane.f32.xlu0 %v799_v43  ;;  %v810_v48 = vmul.f32 %v799_v43, %v799_v43 }
 0x435   :  { %839 = vadd.xlane.f32.xlu1 %v801_v45  ;;  %v842_v49 = vmul.f32 %v801_v45, %v801_v45 }
 0x438   :  { %811 = vadd.xlane.f32.xlu0 %v810_v48 }
 0x439   :  { %843 = vadd.xlane.f32.xlu1 %v842_v49 }
 0x4c1   :  { %v808_v50 = vpop.xlane.xlu0 %807 }
 0x4c2   :  { %v809_v51 = vmul.f32 0.03125, %v808_v50  ;;  %v840_v52 = vpop.xlane.xlu1 %839 }
 0x4c3   :  { %v841_v53 = vmul.f32 0.03125, %v840_v52 }
 0x4c4   :  { %v814_v27 = vmul.f32 %v809_v51, %v809_v51  ;;  %v816_v62 = vsub.f32 %v799_v43, %v809_v51 }
 0x4c5   :  { %v812_v54 = vpop.xlane.xlu0 %811  ;;  %v846_v56 = vmul.f32 %v841_v53, %v841_v53  ;;  %v848_v0 = vsub.f32 %v801_v45, %v841_v53 }
 0x4c6   :  { %v813_v55 = vmul.f32 0.03125, %v812_v54  ;;  %v844_v25 = vpop.xlane.xlu1 %843 }
 0x4c7   :  { %v845_v57 = vmul.f32 0.03125, %v844_v25 }
 0x4c8   :  { %v815_v58 = vsub.f32 %v813_v55, %v814_v27 }
 0x4c9   :  { %v847_v59 = vsub.f32 %v845_v57, %v846_v56 }
 0x4ca   :  { %v817_v60 = vadd.f32 1e-05, %v815_v58 }
 0x4cb   :  { %v849_v61 = vadd.f32 1e-05, %v847_v59 }
 0x4cc   :  { %1117 = vrsqrt.f32 %v817_v60 }
 0x4cd   :  { %1119 = vrsqrt.f32 %v849_v61 }
 0x4d6   :  { %v1118_v63 = vpop.eup %1117 }
 0x4d7   :  { %v1120_v2 = vpop.eup %1119  ;;  %v819_v3 = vmul.f32 %v1118_v63, %v816_v62 }
 0x4d8   :  { %v851_v6 = vmul.f32 %v1120_v2, %v848_v0 }
 0x4d9   :  { %v826_v7 = vmul.f32 %v990_v1, %v819_v3 }
 0x4da   :  { %v858_v9 = vmul.f32 %v994_v4, %v851_v6 }
 0x4db   :  { %v833_v10 = vadd.f32 %v991_v5, %v826_v7 }
 0x4dc   :  { %v865_v12 = vadd.f32 %v995_v8, %v858_v9 }
 0x4dd   :  { %v834_v13 = vmax.f32 %v833_v10, 0.0 }
 0x4de   :  { %v866_v15 = vmax.f32 %v865_v12, 0.0 }
 0x4df   :  { %v874_v16 = vmul.f32 %v996_v11, %v834_v13 }
 0x4e0   :  { %v885_v17 = vmul.f32 %v998_v14, %v866_v15 }
 0x4e1   :  { %875 = vadd.xlane.f32.xlu0 %v874_v16 }
 0x4e2   :  { %886 = vadd.xlane.f32.xlu1 %v885_v17 }
 0x56e   :  { %v876_v19 = vpop.xlane.xlu0 %875 }
 0x56f   :  { %v887_v21 = vpop.xlane.xlu1 %886 }
 0x570   :  { %v891_v22 = vsel %vm890_vm1, %v876_v19, %v887_v21 }
 0x571   :  { %v899_v24 = vadd.f32 %v999_v20, %v891_v22 }
 0x573   :  { %901 = vst.msk [vmem:[%s1463_s13] sm:$0xff] %vm900_vm2, %v899_v24 }
 0x574   :  { %906 = vsyncpa [#allocation3], 1 }
 0x575   :  { %907 = vsyncpa [#allocation5], 1 }
 0x576   :  { %908 = vsyncpa [#allocation8], 1 }

</bundles_post_ra>
